<compile_context>
chip_gen: v7x
topology: tpu7x:2x2x1
jax: 0.10.0
libtpu: 0.0.40
codegen_flags: <defaults>
</compile_context>

<pallas_src>
import jax
import jax.numpy as jnp
from jax import lax
from jax.experimental import pallas as pl
from jax.experimental.pallas import tpu as pltpu

KH = KW = 3  # conv kernel size


def _make_conv_relu_kernel(N, H, W, Cout):
    HW = H * W
    assert W & (W - 1) == 0, "kernel is specialized to power-of-two W (W=16 here)"
    w_shift = W.bit_length() - 1  # log2(W)

    def kernel(x_ref, w_ref, b_ref, o_ref):
        # x_ref: (N, H*W)       f32 VMEM  input images, row-major flattened (Cin=1)
        # w_ref: (Cout, KH*KW)  f32 VMEM  conv weights, [co, kh*KW + kw]
        # b_ref: (Cout, 1)      f32 VMEM  bias
        # o_ref: (N, Cout, H*W) f32 VMEM  NCHW-flattened output
        x = x_ref[...]          # already f32, no cast needed
        w = w_ref[...]          # (Cout, 9)
        b = b_ref[...]          # (Cout, 1)

        # Boundary predicates for the pad=1 halo, computed ONCE and
        # AND-combined per tap (corners need a single extra AND).
        idx = lax.broadcasted_iota(jnp.int32, (N, HW), 1)
        row = idx >> w_shift          # h of each flattened position
        col = idx & (W - 1)           # w of each flattened position
        top_ok = row >= 1             # reading from row-1 is valid (dh = -1)
        bot_ok = row <= H - 2         # reading from row+1 is valid (dh = +1)
        left_ok = col >= 1            # reading from col-1 is valid (dw = -1)
        right_ok = col <= W - 2       # reading from col+1 is valid (dw = +1)

        # Fused accumulator over the whole batch and all output channels,
        # initialised with the broadcast bias (drops the epilogue bias add).
        acc = jnp.broadcast_to(b[None, :, :], (N, Cout, HW))

        # 9 taps: for each, one XLU roll, at most one where (halo mask), and a
        # single broadcast-FMA updating all N*Cout output rows at once.
        for kh in range(KH):
            for kw in range(KW):
                dh, dw = kh - 1, kw - 1
                off = dh * W + dw
                # want: rolled[:, i] == x[:, (i + off) mod HW]  (left shift by off)
                shift = (-off) % HW
                rolled = x if shift == 0 else pltpu.roll(x, shift=shift, axis=1)

                valid = None
                if dh < 0:
                    valid = top_ok
                elif dh > 0:
                    valid = bot_ok
                if dw < 0:
                    valid = left_ok if valid is None else valid & left_ok
                elif dw > 0:
                    valid = right_ok if valid is None else valid & right_ok
                patch = rolled if valid is None else jnp.where(valid, rolled, 0.0)

                t = kh * KW + kw
                # (1, Cout, 1) * (N, 1, HW) -> (N, Cout, HW): one FMA per tap.
                acc = acc + w[:, t:t + 1][None, :, :] * patch[:, None, :]

        # ReLU + one dense, lane-dense (last dim = 256) store.
        o_ref[...] = jnp.maximum(acc, 0.0).astype(o_ref.dtype)

    return kernel


def conv2d_relu_pallas(x_flat, w_mat, b_col, *, N, H, W, Cout):
    HW = H * W
    kernel = _make_conv_relu_kernel(N, H, W, Cout)
    # N=2 here: a single grid step minimises per-step overhead, and the whole
    # working set (a few tens of KB) fits trivially in VMEM on v5e/v6e/v7x,
    # so no tiling / vmem_limit tuning is needed.
    # For large N on v7x (2 TensorCores) this should switch to grid=(N,) with
    # dimension_semantics=("parallel",) and per-batch x/out blocks to shard
    # the batch across both cores; at N=2 that is pure overhead on v5e/v6e
    # and marginal on v7x, so it stays gated off.
    return pl.pallas_call(
        kernel,
        out_shape=jax.ShapeDtypeStruct((N, Cout, HW), x_flat.dtype),
        grid=(1,),
        in_specs=[
            pl.BlockSpec((N, HW), lambda i: (0, 0)),
            pl.BlockSpec((Cout, KH * KW), lambda i: (0, 0)),
            pl.BlockSpec((Cout, 1), lambda i: (0, 0)),
        ],
        out_specs=pl.BlockSpec((N, Cout, HW), lambda i: (0, 0, 0)),
        compiler_params=pltpu.CompilerParams(
            dimension_semantics=("arbitrary",)),
    )(x_flat, w_mat, b_col)


def cnn_forward(x_nchw, params):
    """Mirrors CNN.forward: out = ReLU(Conv2d_1(x)); cnn2 params are unused."""
    w1 = params["cnn1_w"]            # (Cout, Cin=1, KH, KW)  (PyTorch layout)
    b1 = params["cnn1_b"]            # (Cout,)
    N, Cin, H, W = x_nchw.shape
    assert Cin == 1, "cnn1 has in_channels=1"
    Cout = w1.shape[0]

    # All of these are free, layout-preserving reshapes (no transpose, no pad).
    x_flat = x_nchw.reshape(N, H * W)
    w_mat = w1.reshape(Cout, KH * KW)
    b_col = b1.reshape(Cout, 1)

    out_flat = conv2d_relu_pallas(x_flat, w_mat, b_col, N=N, H=H, W=W, Cout=Cout)
    return out_flat.reshape(N, Cout, H, W)   # already NCHW-ordered (free reshape)


def init_params(key):
    # Deterministic init mimicking PyTorch Conv2d defaults (U(+-1/sqrt(fan_in))).
    k1, k2, k3, k4 = jax.random.split(key, 4)
    fan1 = 1 * KH * KW
    bound1 = 1.0 / (fan1 ** 0.5)
    fan2 = 8 * KH * KW
    bound2 = 1.0 / (fan2 ** 0.5)
    return {
        # PyTorch Conv2d weight layout: (out_channels, in_channels, KH, KW)
        "cnn1_w": jax.random.uniform(k1, (8, 1, KH, KW), jnp.float32,
                                     -bound1, bound1),
        "cnn1_b": jax.random.uniform(k2, (8,), jnp.float32, -bound1, bound1),
        # cnn2 exists in __init__ but is never used by forward
        "cnn2_w": jax.random.uniform(k3, (64, 8, KH, KW), jnp.float32,
                                     -bound2, bound2),
        "cnn2_b": jax.random.uniform(k4, (64,), jnp.float32, -bound2, bound2),
    }


if __name__ == "__main__":
    key = jax.random.PRNGKey(0)
    kx, kp = jax.random.split(key)

    # Input: batch=2, channels=1 (Conv2d in_channels=1), spatial 16x16, NCHW.
    x = jax.random.normal(kx, (2, 1, 16, 16), jnp.float32)
    params = init_params(kp)

    out = jax.block_until_ready(cnn_forward(x, params))

    # Sanity check against a plain-JAX conv reference (NCHW / OIHW) + bias + ReLU.
    ref = lax.conv_general_dilated(
        x, params["cnn1_w"], window_strides=(1, 1), padding="SAME",
        dimension_numbers=("NCHW", "OIHW", "NCHW"))
    ref = jnp.maximum(ref + params["cnn1_b"][None, :, None, None], 0.0)

    assert out.shape == (2, 8, 16, 16)
    assert jnp.allclose(out, ref, atol=1e-5, rtol=1e-5)

    print("KERNEL_OK")
</pallas_src>

<mosaic_0001>
module attributes {stable_mosaic.version = 11 : i64} {
  func.func @kernel(%arg0: i32, %arg1: memref<2x256xf32, #tpu.memory_space<vmem>>, %arg2: memref<8x9xf32, #tpu.memory_space<vmem>>, %arg3: memref<8x1xf32, #tpu.memory_space<vmem>>, %arg4: memref<2x8x256xf32, #tpu.memory_space<vmem>>) attributes {dimension_semantics = [#tpu.dimension_semantics<arbitrary>], iteration_bounds = array<i64: 1>, scalar_prefetch = 0 : i64, scratch_operands = 0 : i64, tpu.core_type = #tpu.core_type<tc>, window_params = [{pipeline_mode = #tpu.pipeline_mode<synchronous>, transform_indices = @transform_0, window_bounds = array<i64: 2, 256>}, {pipeline_mode = #tpu.pipeline_mode<synchronous>, transform_indices = @transform_1, window_bounds = array<i64: 8, 9>}, {pipeline_mode = #tpu.pipeline_mode<synchronous>, transform_indices = @transform_2, window_bounds = array<i64: 8, 1>}, {pipeline_mode = #tpu.pipeline_mode<synchronous>, transform_indices = @transform_3, window_bounds = array<i64: 2, 8, 256>}]} {
    %c0 = arith.constant 0 : index
    %c0_0 = arith.constant 0 : index
    %0 = vector.load %arg1[%c0, %c0_0] : memref<2x256xf32, #tpu.memory_space<vmem>>, vector<2x256xf32>
    %c0_1 = arith.constant 0 : index
    %c0_2 = arith.constant 0 : index
    %1 = vector.load %arg2[%c0_1, %c0_2] : memref<8x9xf32, #tpu.memory_space<vmem>>, vector<8x9xf32>
    %c0_3 = arith.constant 0 : index
    %c0_4 = arith.constant 0 : index
    %2 = vector.load %arg3[%c0_3, %c0_4] : memref<8x1xf32, #tpu.memory_space<vmem>>, vector<8x1xf32>
    %3 = tpu.iota {dimensions = array<i32: 1>} : vector<2x256xi32>
    %c4_i32 = arith.constant 4 : i32
    %4 = vector.broadcast %c4_i32 : i32 to vector<2x256xi32>
    %5 = arith.shrsi %3, %4 : vector<2x256xi32>
    %c15_i32 = arith.constant 15 : i32
    %6 = vector.broadcast %c15_i32 : i32 to vector<2x256xi32>
    %7 = arith.andi %3, %6 : vector<2x256xi32>
    %c1_i32 = arith.constant 1 : i32
    %8 = vector.broadcast %c1_i32 : i32 to vector<2x256xi32>
    %9 = arith.cmpi sge, %5, %8 : vector<2x256xi32>
    %c14_i32 = arith.constant 14 : i32
    %10 = vector.broadcast %c14_i32 : i32 to vector<2x256xi32>
    %11 = arith.cmpi sle, %5, %10 : vector<2x256xi32>
    %c1_i32_5 = arith.constant 1 : i32
    %12 = vector.broadcast %c1_i32_5 : i32 to vector<2x256xi32>
    %13 = arith.cmpi sge, %7, %12 : vector<2x256xi32>
    %c14_i32_6 = arith.constant 14 : i32
    %14 = vector.broadcast %c14_i32_6 : i32 to vector<2x256xi32>
    %15 = arith.cmpi sle, %7, %14 : vector<2x256xi32>
    %16 = vector.shape_cast %2 : vector<8x1xf32> to vector<1x8x1xf32>
    %17 = vector.shape_cast %16 : vector<1x8x1xf32> to vector<1x8x1xf32>
    %18 = vector.broadcast %17 : vector<1x8x1xf32> to vector<2x8x256xf32>
    %c17_i32 = arith.constant 17 : i32
    %19 = tpu.dynamic_rotate %0 by %c17_i32 dim 1 : vector<2x256xf32>, i32 -> vector<2x256xf32>
    %20 = arith.andi %9, %13 : vector<2x256xi1>
    %cst = arith.constant 0.000000e+00 : f32
    %21 = vector.broadcast %cst : f32 to vector<2x256xf32>
    %22 = arith.select %20, %19, %21 : vector<2x256xi1>, vector<2x256xf32>
    %23 = vector.extract_strided_slice %1 {offsets = [0, 0], sizes = [8, 1], strides = [1, 1]} : vector<8x9xf32> to vector<8x1xf32>
    %24 = vector.shape_cast %23 : vector<8x1xf32> to vector<1x8x1xf32>
    %25 = vector.shape_cast %22 : vector<2x256xf32> to vector<2x1x256xf32>
    %26 = vector.broadcast %24 : vector<1x8x1xf32> to vector<2x8x256xf32>
    %27 = vector.broadcast %25 : vector<2x1x256xf32> to vector<2x8x256xf32>
    %28 = arith.mulf %26, %27 : vector<2x8x256xf32>
    %29 = arith.addf %18, %28 : vector<2x8x256xf32>
    %c16_i32 = arith.constant 16 : i32
    %30 = tpu.dynamic_rotate %0 by %c16_i32 dim 1 : vector<2x256xf32>, i32 -> vector<2x256xf32>
    %cst_7 = arith.constant 0.000000e+00 : f32
    %31 = vector.broadcast %cst_7 : f32 to vector<2x256xf32>
    %32 = arith.select %9, %30, %31 : vector<2x256xi1>, vector<2x256xf32>
    %33 = vector.extract_strided_slice %1 {offsets = [0, 1], sizes = [8, 1], strides = [1, 1]} : vector<8x9xf32> to vector<8x1xf32>
    %34 = vector.shape_cast %33 : vector<8x1xf32> to vector<1x8x1xf32>
    %35 = vector.shape_cast %32 : vector<2x256xf32> to vector<2x1x256xf32>
    %36 = vector.broadcast %34 : vector<1x8x1xf32> to vector<2x8x256xf32>
    %37 = vector.broadcast %35 : vector<2x1x256xf32> to vector<2x8x256xf32>
    %38 = arith.mulf %36, %37 : vector<2x8x256xf32>
    %39 = arith.addf %29, %38 : vector<2x8x256xf32>
    %c15_i32_8 = arith.constant 15 : i32
    %40 = tpu.dynamic_rotate %0 by %c15_i32_8 dim 1 : vector<2x256xf32>, i32 -> vector<2x256xf32>
    %41 = arith.andi %9, %15 : vector<2x256xi1>
    %cst_9 = arith.constant 0.000000e+00 : f32
    %42 = vector.broadcast %cst_9 : f32 to vector<2x256xf32>
    %43 = arith.select %41, %40, %42 : vector<2x256xi1>, vector<2x256xf32>
    %44 = vector.extract_strided_slice %1 {offsets = [0, 2], sizes = [8, 1], strides = [1, 1]} : vector<8x9xf32> to vector<8x1xf32>
    %45 = vector.shape_cast %44 : vector<8x1xf32> to vector<1x8x1xf32>
    %46 = vector.shape_cast %43 : vector<2x256xf32> to vector<2x1x256xf32>
    %47 = vector.broadcast %45 : vector<1x8x1xf32> to vector<2x8x256xf32>
    %48 = vector.broadcast %46 : vector<2x1x256xf32> to vector<2x8x256xf32>
    %49 = arith.mulf %47, %48 : vector<2x8x256xf32>
    %50 = arith.addf %39, %49 : vector<2x8x256xf32>
    %c1_i32_10 = arith.constant 1 : i32
    %51 = tpu.dynamic_rotate %0 by %c1_i32_10 dim 1 : vector<2x256xf32>, i32 -> vector<2x256xf32>
    %cst_11 = arith.constant 0.000000e+00 : f32
    %52 = vector.broadcast %cst_11 : f32 to vector<2x256xf32>
    %53 = arith.select %13, %51, %52 : vector<2x256xi1>, vector<2x256xf32>
    %54 = vector.extract_strided_slice %1 {offsets = [0, 3], sizes = [8, 1], strides = [1, 1]} : vector<8x9xf32> to vector<8x1xf32>
    %55 = vector.shape_cast %54 : vector<8x1xf32> to vector<1x8x1xf32>
    %56 = vector.shape_cast %53 : vector<2x256xf32> to vector<2x1x256xf32>
    %57 = vector.broadcast %55 : vector<1x8x1xf32> to vector<2x8x256xf32>
    %58 = vector.broadcast %56 : vector<2x1x256xf32> to vector<2x8x256xf32>
    %59 = arith.mulf %57, %58 : vector<2x8x256xf32>
    %60 = arith.addf %50, %59 : vector<2x8x256xf32>
    %61 = vector.extract_strided_slice %1 {offsets = [0, 4], sizes = [8, 1], strides = [1, 1]} : vector<8x9xf32> to vector<8x1xf32>
    %62 = vector.shape_cast %61 : vector<8x1xf32> to vector<1x8x1xf32>
    %63 = vector.shape_cast %0 : vector<2x256xf32> to vector<2x1x256xf32>
    %64 = vector.broadcast %62 : vector<1x8x1xf32> to vector<2x8x256xf32>
    %65 = vector.broadcast %63 : vector<2x1x256xf32> to vector<2x8x256xf32>
    %66 = arith.mulf %64, %65 : vector<2x8x256xf32>
    %67 = arith.addf %60, %66 : vector<2x8x256xf32>
    %c255_i32 = arith.constant 255 : i32
    %68 = tpu.dynamic_rotate %0 by %c255_i32 dim 1 : vector<2x256xf32>, i32 -> vector<2x256xf32>
    %cst_12 = arith.constant 0.000000e+00 : f32
    %69 = vector.broadcast %cst_12 : f32 to vector<2x256xf32>
    %70 = arith.select %15, %68, %69 : vector<2x256xi1>, vector<2x256xf32>
    %71 = vector.extract_strided_slice %1 {offsets = [0, 5], sizes = [8, 1], strides = [1, 1]} : vector<8x9xf32> to vector<8x1xf32>
    %72 = vector.shape_cast %71 : vector<8x1xf32> to vector<1x8x1xf32>
    %73 = vector.shape_cast %70 : vector<2x256xf32> to vector<2x1x256xf32>
    %74 = vector.broadcast %72 : vector<1x8x1xf32> to vector<2x8x256xf32>
    %75 = vector.broadcast %73 : vector<2x1x256xf32> to vector<2x8x256xf32>
    %76 = arith.mulf %74, %75 : vector<2x8x256xf32>
    %77 = arith.addf %67, %76 : vector<2x8x256xf32>
    %c241_i32 = arith.constant 241 : i32
    %78 = tpu.dynamic_rotate %0 by %c241_i32 dim 1 : vector<2x256xf32>, i32 -> vector<2x256xf32>
    %79 = arith.andi %11, %13 : vector<2x256xi1>
    %cst_13 = arith.constant 0.000000e+00 : f32
    %80 = vector.broadcast %cst_13 : f32 to vector<2x256xf32>
    %81 = arith.select %79, %78, %80 : vector<2x256xi1>, vector<2x256xf32>
    %82 = vector.extract_strided_slice %1 {offsets = [0, 6], sizes = [8, 1], strides = [1, 1]} : vector<8x9xf32> to vector<8x1xf32>
    %83 = vector.shape_cast %82 : vector<8x1xf32> to vector<1x8x1xf32>
    %84 = vector.shape_cast %81 : vector<2x256xf32> to vector<2x1x256xf32>
    %85 = vector.broadcast %83 : vector<1x8x1xf32> to vector<2x8x256xf32>
    %86 = vector.broadcast %84 : vector<2x1x256xf32> to vector<2x8x256xf32>
    %87 = arith.mulf %85, %86 : vector<2x8x256xf32>
    %88 = arith.addf %77, %87 : vector<2x8x256xf32>
    %c240_i32 = arith.constant 240 : i32
    %89 = tpu.dynamic_rotate %0 by %c240_i32 dim 1 : vector<2x256xf32>, i32 -> vector<2x256xf32>
    %cst_14 = arith.constant 0.000000e+00 : f32
    %90 = vector.broadcast %cst_14 : f32 to vector<2x256xf32>
    %91 = arith.select %11, %89, %90 : vector<2x256xi1>, vector<2x256xf32>
    %92 = vector.extract_strided_slice %1 {offsets = [0, 7], sizes = [8, 1], strides = [1, 1]} : vector<8x9xf32> to vector<8x1xf32>
    %93 = vector.shape_cast %92 : vector<8x1xf32> to vector<1x8x1xf32>
    %94 = vector.shape_cast %91 : vector<2x256xf32> to vector<2x1x256xf32>
    %95 = vector.broadcast %93 : vector<1x8x1xf32> to vector<2x8x256xf32>
    %96 = vector.broadcast %94 : vector<2x1x256xf32> to vector<2x8x256xf32>
    %97 = arith.mulf %95, %96 : vector<2x8x256xf32>
    %98 = arith.addf %88, %97 : vector<2x8x256xf32>
    %c239_i32 = arith.constant 239 : i32
    %99 = tpu.dynamic_rotate %0 by %c239_i32 dim 1 : vector<2x256xf32>, i32 -> vector<2x256xf32>
    %100 = arith.andi %11, %15 : vector<2x256xi1>
    %cst_15 = arith.constant 0.000000e+00 : f32
    %101 = vector.broadcast %cst_15 : f32 to vector<2x256xf32>
    %102 = arith.select %100, %99, %101 : vector<2x256xi1>, vector<2x256xf32>
    %103 = vector.extract_strided_slice %1 {offsets = [0, 8], sizes = [8, 1], strides = [1, 1]} : vector<8x9xf32> to vector<8x1xf32>
    %104 = vector.shape_cast %103 : vector<8x1xf32> to vector<1x8x1xf32>
    %105 = vector.shape_cast %102 : vector<2x256xf32> to vector<2x1x256xf32>
    %106 = vector.broadcast %104 : vector<1x8x1xf32> to vector<2x8x256xf32>
    %107 = vector.broadcast %105 : vector<2x1x256xf32> to vector<2x8x256xf32>
    %108 = arith.mulf %106, %107 : vector<2x8x256xf32>
    %109 = arith.addf %98, %108 : vector<2x8x256xf32>
    %cst_16 = arith.constant 0.000000e+00 : f32
    %110 = vector.broadcast %cst_16 : f32 to vector<2x8x256xf32>
    %111 = arith.maximumf %109, %110 : vector<2x8x256xf32>
    %c0_17 = arith.constant 0 : index
    %c0_18 = arith.constant 0 : index
    %c0_19 = arith.constant 0 : index
    %112 = vector.load %arg4[%c0_17, %c0_18, %c0_19] : memref<2x8x256xf32, #tpu.memory_space<vmem>>, vector<2x8x256xf32>
    tpu.vector_store %arg4[%c0_17, %c0_18, %c0_19], %111 {strides = array<i32>} : memref<2x8x256xf32, #tpu.memory_space<vmem>>, vector<2x8x256xf32>,
    return
  }
  func.func @transform_0(%arg0: i32) -> (i32, i32) {
    %c0_i32 = arith.constant 0 : i32
    %c0_i32_0 = arith.constant 0 : i32
    %c0_i32_1 = arith.constant 0 : i32
    return %c0_i32, %c0_i32_0 : i32, i32
  }
  func.func @transform_1(%arg0: i32) -> (i32, i32) {
    %c0_i32 = arith.constant 0 : i32
    %c0_i32_0 = arith.constant 0 : i32
    %c0_i32_1 = arith.constant 0 : i32
    return %c0_i32, %c0_i32_0 : i32, i32
  }
  func.func @transform_2(%arg0: i32) -> (i32, i32) {
    %c0_i32 = arith.constant 0 : i32
    %c0_i32_0 = arith.constant 0 : i32
    %c0_i32_1 = arith.constant 0 : i32
    return %c0_i32, %c0_i32_0 : i32, i32
  }
  func.func @transform_3(%arg0: i32) -> (i32, i32, i32) {
    %c0_i32 = arith.constant 0 : i32
    %c0_i32_0 = arith.constant 0 : i32
    %c0_i32_1 = arith.constant 0 : i32
    %c0_i32_2 = arith.constant 0 : i32
    return %c0_i32, %c0_i32_0, %c0_i32_1 : i32, i32, i32
  }
}

</mosaic_0001>

<bundles_post_ra>
// kernel: tpu_custom_call.1
= control target key start
LH: loop header
LB: loop body
LE: loop exit
PB: predicated region body
PF: predicated region fallthrough
CT: control target
= control target key end

     0   :  { %v18_v0 = vlaneseq  ;;  %v705_v1 = vmov 1983009808   ;;  %v706_v4 = vmov 0   ;;  %v707_v5 = vmov 1   ;;  %s971_s0 = inlined_call_operand.vmem [shape: f32[2,256], index: 0, kind: input, shape index: {}]   ;;  %s972_s1 = inlined_call_operand.vmem [shape: f32[8,9], index: 1, kind: input, shape index: {}]   ;;  %s973_s2 = inlined_call_operand.vmem [shape: f32[8,1], index: 2, kind: input, shape index: {}]   ;;  %s974_s3 = inlined_call_operand.hbm [shape: f32[2,8,256], index: 3, kind: output, shape index: {}]  }
   0x1   :  { %v40_v2 = vunpack.c.l.s4 %v705_v1  ;;  %671 = vset.pattern.permute.xlu0 %v706_v4  ;;  %672 = vset.pattern.permute.xlu1 %v707_v5 }
   0x2   :  { %v43_v3 = vshrl.u32 %v18_v0, 7 }
   0x3   :  { %v41_v6 = vunpack.c.0.s8 %v40_v2 }
   0x4   :  { %8 = vsyncpa [#allocation3], 0  ;;  %v15_v7 = vld [vmem:[%s971_s0] sm:$0xf]  ;;  %s708_s14 = smov 16   ;;  %s709_s15 = smov 17  }
   0x5   :  { %v44_v8 = vsub.s32 %v41_v6, %v43_v3  ;;  %s710_s16 = smov 15   ;;  %v16_v11 = vld [vmem:[%s972_s1] sm:$0xff]  ;;  %s711_s19 = smov 1   ;;  %v712_v13 = vmov 1966171168   ;;  %v713_v15 = vmov 2  }
   0x6   :  { %v17_v12 = vld [vmem:[%s973_s2] sm:$0xff]  ;;  %v64_v14 = vunpack.c.l.s4 %v712_v13  ;;  %s714_s21 = smov 127   ;;  %v715_v18 = vmov 3   ;;  %v716_v19 = vmov 7   ;;  %v763_v21 = vsub.s32 0, %v43_v3  ;;  %s718_s1 = smov 113  }
   0x7   :  { %v45_v9 = vrot.slane %v15_v7, %v44_v8  ;;  %v765_v22 = vsub.s32 1, %v43_v3  ;;  %v717_v24 = vmov 4   ;;  %v719_v29 = vmov 5   ;;  %s720_s2 = smov 112   ;;  %s723_s22 = smov 111  }
   0x8   :  { %v65_v16 = vunpack.c.0.s8 %v64_v14  ;;  %v721_v30 = vmov 6   ;;  %v722_v31 = vmov 8   ;;  %v780_v32 = vand.u32 127, %v18_v0  ;;  %s724_s23 = smov [#allocation2]  }
   0x9   :  { %118 = vrot.lane.b32.xlu1 %v45_v9, %s708_s14  ;;  %49 = vrot.lane.b32.xlu0 %v45_v9, %s709_s15  ;;  %v46_v10 = vcombine.high %v45_v9, %v45_v9  ;;  %s639_s24 = sshll.u32 %s724_s23, 4  ;;  %s640_s24 = int_to_ptr.vmem [resolvable:$true] %s639_s24 }
   0xa   :  { %v758_v17 = vsub.s32 %v65_v16, %v43_v3  ;;  %v783_v33 = vadd.s32 128, %v780_v32  ;;  %v23_v34 = vand.u32 15, %v780_v32  ;;  %v21_v35 = vshra.s32 %v780_v32, 4  ;;  %s681_s25 = scalar_lea.vmem %s640_s24, 512  ;;  %p686_p1 = scmp.lt.s32.totalorder %s640_s24, %s640_s24 }
   0xb   :  { %vm122_vm0 = vcmp.lt.s32.totalorder %v780_v32, 16  ;;  %vm188_vm5 = vcmp.lt.s32.totalorder %v780_v32, 15  ;;  %vm53_vm9 = vcmp.lt.s32.totalorder %v780_v32, 17  ;;  %vm256_vm13 = vcmp.lt.s32.totalorder %v780_v32, 1  ;;  %p682_p0 = scmp.ne.s32.totalorder %s640_s24, %s681_s25  ;;  %p687_p2 = scmp.lt.s32.totalorder %s681_s25, %s681_s25 }
   0xc   :  { %v761_v20 = vrot.slane %v15_v7, %v758_v17  ;;  %v22_v36 = vshra.s32 %v783_v33, 4  ;;  %v24_v37 = vand.u32 15, %v783_v33  ;;  %vm790_vm1 = vcmp.le.s32.totalorder %v23_v34, 14 }
   0xd   :  { %184 = vrot.lane.b32.xlu0 %v45_v9, %s710_s16  ;;  %120 = vrot.lane.b32.xlu1 %v46_v10, %s708_s14  ;;  %vm796_vm2 = vcmp.ge.s32.totalorder %v21_v35, 1  ;;  %vm828_vm10 = vcmp.ge.s32.totalorder %v23_v34, 1  ;;  %vm362_vm14 = vcmp.lt.s32.totalorder %v780_v32, 127  ;;  %vm885_vm15 = vcmp.le.s32.totalorder %v21_v35, 14  ;;  %p688_p3 = por %p687_p2, %p686_p1 }
   0xe   :  { %v769_v23 = vcombine.high %v761_v20, %v761_v20  ;;  %v333_v25 = vrot.slane %v761_v20, %v763_v21  ;;  %v337_v26 = vrot.slane %v761_v20, %v765_v22  ;;  %vm802_vm3 = vcmp.ge.s32.totalorder %v22_v36, 1  ;;  %vm191_vm6 = vmand %vm796_vm2, %vm790_vm1 }
   0xf   :  { %vm806_vm4 = vcmp.le.s32.totalorder %v24_v37, 14  ;;  %vm823_vm8 = vcmp.ge.s32.totalorder %v24_v37, 1  ;;  %vm56_vm12 = vmand %vm796_vm2, %vm828_vm10  ;;  %p689_p4 = pnand %p688_p3, %p682_p0 }
  0x10   :  { %v341_v27 = vrot.slane %v769_v23, %v763_v21  ;;  %v345_v28 = vrot.slane %v769_v23, %v765_v22  ;;  %vm192_vm7 = vmand %vm802_vm3, %vm806_vm4 }
  0x11   :  { %186 = vrot.lane.b32.xlu1 %v46_v10, %s710_s16  ;;  %51 = vrot.lane.b32.xlu0 %v46_v10, %s709_s15  ;;  %vm57_vm11 = vmand %vm802_vm3, %vm823_vm8 }
  0x15   :  { %252 = vrot.lane.b32.xlu1 %v45_v9, %s711_s19  ;;  %87 = vperm.xlu0 %671, %v16_v11  }
  0x19   :  { %254 = vrot.lane.b32.xlu1 %v46_v10, %s711_s19  ;;  %35 = vperm.xlu0 %671, %v17_v12  }
  0x1d   :  { %153 = vperm.xlu1 %672, %v16_v11   ;;  %673 = vset.pattern.permute.xlu0 %v713_v15 }
  0x1e   :  { %221 = vperm.xlu0 %673, %v16_v11  }
  0x21   :  { %358 = vrot.lane.b32.xlu1 %v45_v9, %s714_s21 }
  0x22   :  { %674 = vset.pattern.permute.xlu0 %v715_v18  ;;  %678 = vset.pattern.permute.xlu1 %v716_v19 }
  0x23   :  { %287 = vperm.xlu0 %674, %v16_v11  }
  0x25   :  { %360 = vrot.lane.b32.xlu1 %v46_v10, %s714_s21 }
  0x27   :  { %675 = vset.pattern.permute.xlu0 %v717_v24 }
  0x28   :  { %327 = vperm.xlu0 %675, %v16_v11  }
  0x29   :  { %424 = vrot.lane.b32.xlu1 %v45_v9, %s718_s1 }
  0x2c   :  { %676 = vset.pattern.permute.xlu0 %v719_v29 }
  0x2d   :  { %426 = vrot.lane.b32.xlu1 %v46_v10, %s718_s1  ;;  %393 = vperm.xlu0 %676, %v16_v11  }
  0x31   :  { %492 = vrot.lane.b32.xlu1 %v45_v9, %s720_s2  ;;  %677 = vset.pattern.permute.xlu0 %v721_v30 }
  0x32   :  { %461 = vperm.xlu0 %677, %v16_v11  }
  0x35   :  { %494 = vrot.lane.b32.xlu1 %v46_v10, %s720_s2 }
  0x36   :  { %680 = vset.pattern.permute.xlu0 %v722_v31 }
  0x39   :  { %558 = vrot.lane.b32.xlu1 %v45_v9, %s723_s22 }
  0x3d   :  { %560 = vrot.lane.b32.xlu1 %v46_v10, %s723_s22 }
  0x41   :  { %527 = vperm.xlu1 %678, %v16_v11  }
  0x45   :  { %679 = vset.pattern.permute.xlu1 %v722_v31 }
  0x46   :  { %595 = vperm.xlu1 %679, %v16_v11  }
  0x7b   :  { %v119_v38 = vpop.permute.xlu1 %118  ;;  %v50_v39 = vpop.permute.xlu0 %49 }
  0x7f   :  { %v121_v44 = vpop.permute.xlu1 %120  ;;  %v185_v45 = vpop.permute.xlu0 %184 }
  0x80   :  { %v123_v46 = vsel %vm122_vm0, %v119_v38, %v121_v44  ;;  %v124_v47 = vsel %vm122_vm0, %v121_v44, %v119_v38  ;;  %vm891_vm0 = vcmp.le.s32.totalorder %v22_v36, 14 }
  0x81   :  { %v125_v48 = vsel %vm796_vm2, %v124_v47, 0.0  ;;  %v126_v49 = vsel %vm802_vm3, %v123_v46, 0.0  ;;  %vm428_vm2 = vcmp.lt.s32.totalorder %v780_v32, 113  ;;  %vm431_vm3 = vmand %vm885_vm15, %vm828_vm10 }
  0x82   :  { %v129_v51 = vcombine.low %v125_v48, %v126_v49 }
  0x83   :  { %v187_v53 = vpop.permute.xlu1 %186  ;;  %v52_v54 = vpop.permute.xlu0 %51 }
  0x84   :  { %v136_v55 = vrot.slane %v129_v51, %v758_v17  ;;  %v189_v56 = vsel %vm188_vm5, %v185_v45, %v187_v53  ;;  %v190_v57 = vsel %vm188_vm5, %v187_v53, %v185_v45  ;;  %v54_v58 = vsel %vm53_vm9, %v50_v39, %v52_v54  ;;  %vm432_vm5 = vmand %vm891_vm0, %vm823_vm8 }
  0x85   :  { %v193_v59 = vsel %vm191_vm6, %v190_v57, 0.0  ;;  %v194_v60 = vsel %vm192_vm7, %v189_v56, 0.0  ;;  %v55_v61 = vsel %vm53_vm9, %v52_v54, %v50_v39  ;;  %v59_v62 = vsel %vm57_vm11, %v54_v58, 0.0  ;;  %vm566_vm9 = vmand %vm891_vm0, %vm806_vm4 }
  0x86   :  { %v137_v63 = vcombine.high %v136_v55, %v136_v55  ;;  %v144_v0 = vrot.slane %v136_v55, %v758_v17  ;;  %v197_v1 = vcombine.low %v193_v59, %v194_v60  ;;  %v58_v2 = vsel %vm56_vm12, %v55_v61, 0.0 }
  0x87   :  { %v253_v3 = vpop.permute.xlu1 %252  ;;  %v62_v4 = vcombine.low %v58_v2, %v59_v62  ;;  %vm496_vm6 = vcmp.lt.s32.totalorder %v780_v32, 112  ;;  %vm562_vm7 = vcmp.lt.s32.totalorder %v780_v32, 111 }
  0x88   :  { %v204_v5 = vrot.slane %v197_v1, %v758_v17  ;;  %v151_v6 = vrot.slane %v137_v63, %v758_v17  ;;  %v159_v7 = vrot.slane %v144_v0, %v763_v21  ;;  %v163_v8 = vrot.slane %v144_v0, %v765_v22 }
  0x89   :  { %v69_v9 = vrot.slane %v62_v4, %v758_v17 }
  0x8a   :  { %v205_v10 = vcombine.high %v204_v5, %v204_v5  ;;  %v212_v11 = vrot.slane %v204_v5, %v758_v17  ;;  %v167_v12 = vrot.slane %v151_v6, %v763_v21  ;;  %v171_v13 = vrot.slane %v151_v6, %v765_v22 }
  0x8b   :  { %v255_v14 = vpop.permute.xlu1 %254  ;;  %v70_v15 = vcombine.high %v69_v9, %v69_v9  ;;  %v77_v16 = vrot.slane %v69_v9, %v758_v17 }
  0x8c   :  { %v257_v18 = vsel %vm256_vm13, %v253_v3, %v255_v14  ;;  %v258_v19 = vsel %vm256_vm13, %v255_v14, %v253_v3  ;;  %v219_v24 = vrot.slane %v205_v10, %v758_v17  ;;  %v227_v29 = vrot.slane %v212_v11, %v763_v21 }
  0x8d   :  { %v259_v30 = vsel %vm828_vm10, %v258_v19, 0.0  ;;  %v260_v31 = vsel %vm823_vm8, %v257_v18, 0.0  ;;  %v84_v34 = vrot.slane %v70_v15, %v758_v17  ;;  %v93_v37 = vrot.slane %v77_v16, %v763_v21  ;;  %vm565_vm8 = vmand %vm885_vm15, %vm790_vm1 }
  0x8e   :  { %v263_v38 = vcombine.low %v259_v30, %v260_v31  ;;  %v97_v39 = vrot.slane %v77_v16, %v765_v22  ;;  %v231_v41 = vrot.slane %v212_v11, %v765_v22  ;;  %v235_v42 = vrot.slane %v219_v24, %v763_v21 }
  0x8f   :  { %v101_v44 = vrot.slane %v84_v34, %v763_v21  ;;  %v105_v45 = vrot.slane %v84_v34, %v765_v22  ;;  %v239_v46 = vrot.slane %v219_v24, %v765_v22 }
  0x90   :  { %v270_v47 = vrot.slane %v263_v38, %v758_v17 }
  0x92   :  { %v271_v48 = vcombine.high %v270_v47, %v270_v47  ;;  %v278_v49 = vrot.slane %v270_v47, %v758_v17 }
  0x94   :  { %v88_v51 = vpop.permute.xlu0 %87  ;;  %v285_v53 = vrot.slane %v271_v48, %v758_v17  ;;  %v293_v54 = vrot.slane %v278_v49, %v763_v21  ;;  %v297_v55 = vrot.slane %v278_v49, %v765_v22 }
  0x95   :  { %v112_v58 = vmul.f32 %v101_v44, %v88_v51  ;;  %v113_v59 = vmul.f32 %v105_v45, %v88_v51  ;;  %v110_v60 = vmul.f32 %v93_v37, %v88_v51  ;;  %v111_v61 = vmul.f32 %v97_v39, %v88_v51 }
  0x96   :  { %v301_v56 = vrot.slane %v285_v53, %v763_v21  ;;  %v305_v57 = vrot.slane %v285_v53, %v765_v22 }
  0x98   :  { %v36_v62 = vpop.permute.xlu0 %35 }
  0x99   :  { %v116_v63 = vadd.f32 %v112_v58, %v36_v62  ;;  %v117_v0 = vadd.f32 %v113_v59, %v36_v62  ;;  %v114_v1 = vadd.f32 %v110_v60, %v36_v62  ;;  %v115_v2 = vadd.f32 %v111_v61, %v36_v62 }
  0x9c   :  { %v154_v3 = vpop.permute.xlu1 %153 }
  0x9d   :  { %v176_v4 = vmul.f32 %v159_v7, %v154_v3  ;;  %v177_v5 = vmul.f32 %v163_v8, %v154_v3  ;;  %v178_v6 = vmul.f32 %v167_v12, %v154_v3  ;;  %v179_v9 = vmul.f32 %v171_v13, %v154_v3  ;;  %v222_v10 = vpop.permute.xlu0 %221 }
  0x9e   :  { %v244_v11 = vmul.f32 %v227_v29, %v222_v10  ;;  %v245_v14 = vmul.f32 %v231_v41, %v222_v10  ;;  %v246_v15 = vmul.f32 %v235_v42, %v222_v10  ;;  %v247_v16 = vmul.f32 %v239_v46, %v222_v10 }
  0x9f   :  { %v180_v18 = vadd.f32 %v176_v4, %v114_v1  ;;  %v181_v19 = vadd.f32 %v177_v5, %v115_v2  ;;  %v182_v24 = vadd.f32 %v178_v6, %v116_v63  ;;  %v183_v30 = vadd.f32 %v179_v9, %v117_v0 }
  0xa0   :  { %v359_v31 = vpop.permute.xlu1 %358 }
  0xa1   :  { %v248_v34 = vadd.f32 %v244_v11, %v180_v18  ;;  %v249_v37 = vadd.f32 %v245_v14, %v181_v19  ;;  %v250_v38 = vadd.f32 %v246_v15, %v182_v24  ;;  %v251_v39 = vadd.f32 %v247_v16, %v183_v30 }
  0xa2   :  { %v288_v44 = vpop.permute.xlu0 %287 }
  0xa3   :  { %v310_v7 = vmul.f32 %v293_v54, %v288_v44  ;;  %v311_v8 = vmul.f32 %v297_v55, %v288_v44  ;;  %v312_v12 = vmul.f32 %v301_v56, %v288_v44  ;;  %v313_v13 = vmul.f32 %v305_v57, %v288_v44 }
  0xa4   :  { %v361_v29 = vpop.permute.xlu1 %360 }
  0xa5   :  { %v314_v41 = vadd.f32 %v310_v7, %v248_v34  ;;  %v315_v42 = vadd.f32 %v311_v8, %v249_v37  ;;  %v316_v45 = vadd.f32 %v312_v12, %v250_v38  ;;  %v317_v46 = vadd.f32 %v313_v13, %v251_v39 }
  0xa6   :  { %v363_v47 = vsel %vm362_vm14, %v359_v31, %v361_v29  ;;  %v364_v48 = vsel %vm362_vm14, %v361_v29, %v359_v31 }
  0xa7   :  { %v365_v49 = vsel %vm790_vm1, %v363_v47, 0.0  ;;  %v366_v51 = vsel %vm806_vm4, %v364_v48, 0.0  ;;  %v328_v53 = vpop.permute.xlu0 %327 }
  0xa8   :  { %v369_v56 = vcombine.low %v365_v49, %v366_v51  ;;  %v350_v57 = vmul.f32 %v333_v25, %v328_v53  ;;  %v351_v58 = vmul.f32 %v337_v26, %v328_v53  ;;  %v352_v35 = vmul.f32 %v341_v27, %v328_v53  ;;  %v425_v59 = vpop.permute.xlu1 %424 }
  0xa9   :  { %v353_v33 = vmul.f32 %v345_v28, %v328_v53 }
  0xaa   :  { %v376_v36 = vrot.slane %v369_v56, %v758_v17  ;;  %v354_v60 = vadd.f32 %v350_v57, %v314_v41  ;;  %v355_v61 = vadd.f32 %v351_v58, %v315_v42  ;;  %v356_v25 = vadd.f32 %v352_v35, %v316_v45 }
  0xab   :  { %v357_v20 = vadd.f32 %v353_v33, %v317_v46 }
  0xac   :  { %v377_v23 = vcombine.high %v376_v36, %v376_v36  ;;  %v384_v26 = vrot.slane %v376_v36, %v758_v17  ;;  %v427_v27 = vpop.permute.xlu1 %426  ;;  %v394_v63 = vpop.permute.xlu0 %393 }
  0xad   :  { %v429_v28 = vsel %vm428_vm2, %v425_v59, %v427_v27  ;;  %v430_v62 = vsel %vm428_vm2, %v427_v27, %v425_v59 }
  0xae   :  { %v433_v0 = vsel %vm431_vm3, %v429_v28, 0.0  ;;  %v434_v1 = vsel %vm432_vm5, %v430_v62, 0.0  ;;  %v391_v52 = vrot.slane %v377_v23, %v758_v17  ;;  %v399_v2 = vrot.slane %v384_v26, %v763_v21 }
  0xaf   :  { %v437_v3 = vcombine.low %v433_v0, %v434_v1  ;;  %v403_v4 = vrot.slane %v384_v26, %v765_v22 }
  0xb0   :  { %v407_v50 = vrot.slane %v391_v52, %v763_v21  ;;  %v411_v5 = vrot.slane %v391_v52, %v765_v22  ;;  %v416_v6 = vmul.f32 %v399_v2, %v394_v63  ;;  %v493_v9 = vpop.permute.xlu1 %492 }
  0xb1   :  { %v444_v10 = vrot.slane %v437_v3, %v758_v17  ;;  %v417_v11 = vmul.f32 %v403_v4, %v394_v63  ;;  %v462_v37 = vpop.permute.xlu0 %461 }
  0xb2   :  { %v418_v14 = vmul.f32 %v407_v50, %v394_v63  ;;  %v419_v15 = vmul.f32 %v411_v5, %v394_v63  ;;  %v420_v16 = vadd.f32 %v416_v6, %v354_v60 }
  0xb3   :  { %v445_v18 = vcombine.high %v444_v10, %v444_v10  ;;  %v421_v19 = vadd.f32 %v417_v11, %v355_v61  ;;  %v452_v24 = vrot.slane %v444_v10, %v758_v17 }
  0xb4   :  { %v495_v30 = vpop.permute.xlu1 %494  ;;  %v422_v31 = vadd.f32 %v418_v14, %v356_v25  ;;  %v423_v34 = vadd.f32 %v419_v15, %v357_v20 }
  0xb5   :  { %v497_v38 = vsel %vm496_vm6, %v493_v9, %v495_v30  ;;  %v498_v39 = vsel %vm496_vm6, %v495_v30, %v493_v9  ;;  %v459_v44 = vrot.slane %v445_v18, %v758_v17  ;;  %v467_v7 = vrot.slane %v452_v24, %v763_v21 }
  0xb6   :  { %v499_v8 = vsel %vm885_vm15, %v497_v38, 0.0  ;;  %v500_v12 = vsel %vm891_vm0, %v498_v39, 0.0  ;;  %v471_v13 = vrot.slane %v452_v24, %v765_v22 }
  0xb7   :  { %v503_v29 = vcombine.low %v499_v8, %v500_v12  ;;  %v475_v41 = vrot.slane %v459_v44, %v763_v21  ;;  %v479_v42 = vrot.slane %v459_v44, %v765_v22  ;;  %v484_v45 = vmul.f32 %v467_v7, %v462_v37 }
  0xb8   :  { %v485_v46 = vmul.f32 %v471_v13, %v462_v37  ;;  %v559_v47 = vpop.permute.xlu1 %558 }
  0xb9   :  { %v510_v48 = vrot.slane %v503_v29, %v758_v17  ;;  %v486_v49 = vmul.f32 %v475_v41, %v462_v37  ;;  %v487_v51 = vmul.f32 %v479_v42, %v462_v37  ;;  %v488_v53 = vadd.f32 %v484_v45, %v420_v16 }
  0xba   :  { %v489_v56 = vadd.f32 %v485_v46, %v421_v19 }
  0xbb   :  { %v511_v57 = vcombine.high %v510_v48, %v510_v48  ;;  %v518_v58 = vrot.slane %v510_v48, %v758_v17  ;;  %v490_v35 = vadd.f32 %v486_v49, %v422_v31  ;;  %v491_v59 = vadd.f32 %v487_v51, %v423_v34 }
  0xbc   :  { %v561_v33 = vpop.permute.xlu1 %560 }
  0xbd   :  { %v563_v36 = vsel %vm562_vm7, %v559_v47, %v561_v33  ;;  %v564_v60 = vsel %vm562_vm7, %v561_v33, %v559_v47  ;;  %v525_v32 = vrot.slane %v511_v57, %v758_v17  ;;  %v533_v40 = vrot.slane %v518_v58, %v763_v21 }
  0xbe   :  { %v567_v61 = vsel %vm565_vm8, %v563_v36, 0.0  ;;  %v568_v54 = vsel %vm566_vm9, %v564_v60, 0.0  ;;  %v537_v25 = vrot.slane %v518_v58, %v765_v22 }
  0xbf   :  { %v571_v20 = vcombine.low %v567_v61, %v568_v54  ;;  %v541_v23 = vrot.slane %v525_v32, %v763_v21  ;;  %v545_v26 = vrot.slane %v525_v32, %v765_v22 }
  0xc0   :  { %v528_v43 = vpop.permute.xlu1 %527 }
  0xc1   :  { %v578_v55 = vrot.slane %v571_v20, %v758_v17  ;;  %v550_v27 = vmul.f32 %v533_v40, %v528_v43  ;;  %v551_v28 = vmul.f32 %v537_v25, %v528_v43  ;;  %v552_v62 = vmul.f32 %v541_v23, %v528_v43 }
  0xc2   :  { %v553_v63 = vmul.f32 %v545_v26, %v528_v43 }
  0xc3   :  { %v579_v0 = vcombine.high %v578_v55, %v578_v55  ;;  %v586_v1 = vrot.slane %v578_v55, %v758_v17  ;;  %v554_v52 = vadd.f32 %v550_v27, %v488_v53  ;;  %v555_v2 = vadd.f32 %v551_v28, %v489_v56 }
  0xc4   :  { %v556_v3 = vadd.f32 %v552_v62, %v490_v35  ;;  %v557_v4 = vadd.f32 %v553_v63, %v491_v59 }
  0xc5   :  { %v593_v50 = vrot.slane %v579_v0, %v758_v17  ;;  %v601_v5 = vrot.slane %v586_v1, %v763_v21  ;;  %v605_v6 = vrot.slane %v586_v1, %v765_v22  ;;  %v596_v9 = vpop.permute.xlu1 %595 }
  0xc7   :  { %v609_v10 = vrot.slane %v593_v50, %v763_v21  ;;  %v613_v11 = vrot.slane %v593_v50, %v765_v22  ;;  %v618_v14 = vmul.f32 %v601_v5, %v596_v9  ;;  %v619_v15 = vmul.f32 %v605_v6, %v596_v9 }
  0xc9   :  { %v620_v16 = vmul.f32 %v609_v10, %v596_v9  ;;  %v621_v18 = vmul.f32 %v613_v11, %v596_v9  ;;  %v622_v19 = vadd.f32 %v618_v14, %v554_v52  ;;  %v623_v24 = vadd.f32 %v619_v15, %v555_v2 }
  0xcb   :  { %v624_v30 = vadd.f32 %v620_v16, %v556_v3  ;;  %v625_v31 = vadd.f32 %v621_v18, %v557_v4  ;;  %v626_v17 = vmax.f32 %v622_v19, 0.0  ;;  %v627_v34 = vmax.f32 %v623_v24, 0.0 }
  0xcd   :  { %v628_v37 = vmax.f32 %v624_v30, 0.0  ;;  %v629_v38 = vmax.f32 %v625_v31, 0.0  ;;  %630 = vst [vmem:[#allocation2] sm:$0xff] %v626_v17  ;;  %631 = vst [vmem:[#allocation2 + $0x8] sm:$0xff] %v627_v34 }
  0xcf   :  { %632 = vst [vmem:[#allocation2 + $0x10] sm:$0xff] %v628_v37  ;;  %633 = vst [vmem:[#allocation2 + $0x18] sm:$0xff] %v629_v38 }
  0xd0   :  { %692 = shalt.err (!%p689_p4)
}
  0xd1   :  { %s693_s28 = scalar_lea.hbm %s974_s3, 512 }
  0xd2   :  { %p694_p5 = scmp.ne.s32.totalorder %s974_s3, %s693_s28  ;;  %p697_p6 = scmp.lt.u32.totalorder %s693_s28, %s974_s3 }
  0xd4   :  { %p699_p7 = pnand %p697_p6, %p694_p5 }
  0xd6   :  { %702 = shalt.err (!%p699_p7)
}
  0xd7   :  { %s725_s6 = smov 256  }
  0xd8   :  { %645 = dma.vmem_to_hbm [thread:$0]  %s640_s24, 512, %s974_s3, [#allocation3], %s725_s6, %s725_s6, %s708_s14  }
  0xd9   :  { %703 = dma.done.wait [#allocation3], 512  }
  0xda   :  { %704 = vsyncadd [#allocation3], 4294966784 }
  0xdb   :  { %649 = vsyncpa [#allocation3], 1 }

</bundles_post_ra>
